<compile_context>
chip_gen: v6e
topology: v6e:2x2x1
jax: 0.10.0
libtpu: 0.0.40
codegen_flags: <defaults>
</compile_context>

<pallas_src>
import jax
import jax.numpy as jnp
from jax.experimental import pallas as pl
from jax.experimental.pallas import tpu as pltpu

OUT_W = 8          # padded width of the final (16 -> 1) layer; col 0 is the real output
BIAS_PACK_W = 512  # 4 bias chunks at 128-aligned lane offsets


def mlp_kernel(x_ref, w1_ref, w2_ref, w3_ref, w4_ref, b_ref, o_ref):
    # Cast x to bf16 in vregs (free on the VPU) right before the first MXU dot.
    x = x_ref[...].astype(jnp.bfloat16)

    # Static, 128-aligned views into the packed bias slab.
    b1 = b_ref[:, 0:64]
    b2 = b_ref[:, 128:160]
    b3 = b_ref[:, 256:272]
    b4 = b_ref[:, 384:384 + OUT_W]

    # fc1 + ReLU   (bf16 x bf16 -> f32 accumulate on the MXU)
    h = jnp.dot(x, w1_ref[...], preferred_element_type=jnp.float32)
    h = jnp.maximum(h + b1, 0.0)
    # dropout1: identity in eval mode
    # fc2 + ReLU
    h = jnp.dot(h.astype(jnp.bfloat16), w2_ref[...],
                preferred_element_type=jnp.float32)
    h = jnp.maximum(h + b2, 0.0)
    # dropout2: identity in eval mode
    # fc3 + ReLU
    h = jnp.dot(h.astype(jnp.bfloat16), w3_ref[...],
                preferred_element_type=jnp.float32)
    h = jnp.maximum(h + b3, 0.0)
    # fc4 (padded to OUT_W lanes) + sigmoid
    z = jnp.dot(h.astype(jnp.bfloat16), w4_ref[...],
                preferred_element_type=jnp.float32) + b4
    o_ref[...] = jax.nn.sigmoid(z)


def _round_up(n, m):
    return ((n + m - 1) // m) * m


def simple_nn_forward(x, params, tile_b=1024):
    """x: (B, D) float32; params: dict of f32 weights (in,out) / biases (1,out)."""
    B, D = x.shape

    # --- batch tiling ---
    b8 = _round_up(B, 8)
    tile_b = max(8, min(tile_b, b8))

    # Keep double-buffered x (f32) + out (f32) comfortably inside scoped VMEM
    # (v7x has only 32 MiB scoped / 64 MiB physical); only bites for large D.
    vmem_budget = 16 * 1024 * 1024
    per_row_bytes = 2 * (D * 4 + OUT_W * 4)          # 2x for double buffering
    max_rows = max(8, ((vmem_budget // per_row_bytes) // 8) * 8)
    tile_b = min(tile_b, max_rows)

    # v7x megacore: keep >= 2 grid steps when the batch allows (harmless on v5e/v6e).
    if b8 >= 16:
        tile_b = min(tile_b, _round_up(pl.cdiv(b8, 2), 8))
    tile_b = _round_up(tile_b, 8)

    b_pad = _round_up(b8, tile_b)
    n_tiles = b_pad // tile_b

    # --- operands: x stays f32 (cast in-kernel); weights bf16; biases packed f32 ---
    x = x.astype(jnp.float32)
    xp = x if b_pad == B else jnp.zeros((b_pad, D), jnp.float32).at[:B].set(x)

    w1 = params["w1"].astype(jnp.bfloat16)
    w2 = params["w2"].astype(jnp.bfloat16)
    w3 = params["w3"].astype(jnp.bfloat16)
    # zero-pad the 1-wide final layer to OUT_W lanes
    w4 = jnp.zeros((16, OUT_W), jnp.bfloat16).at[:, :1].set(
        params["w4"].astype(jnp.bfloat16))

    b_pack = jnp.zeros((1, BIAS_PACK_W), jnp.float32)
    b_pack = b_pack.at[:, 0:64].set(params["b1"].astype(jnp.float32))
    b_pack = b_pack.at[:, 128:160].set(params["b2"].astype(jnp.float32))
    b_pack = b_pack.at[:, 256:272].set(params["b3"].astype(jnp.float32))
    b_pack = b_pack.at[:, 384:385].set(params["b4"].astype(jnp.float32))

    # --- specs: x/out tiled over batch, weights/biases resident (constant index_map) ---
    in_specs = [
        pl.BlockSpec((tile_b, D), lambda i: (i, 0)),     # x (f32, cast in-kernel)
        pl.BlockSpec(w1.shape, lambda i: (0, 0)),        # w1
        pl.BlockSpec(w2.shape, lambda i: (0, 0)),        # w2
        pl.BlockSpec(w3.shape, lambda i: (0, 0)),        # w3
        pl.BlockSpec(w4.shape, lambda i: (0, 0)),        # w4 (padded)
        pl.BlockSpec(b_pack.shape, lambda i: (0, 0)),    # packed biases
    ]
    out_spec = pl.BlockSpec((tile_b, OUT_W), lambda i: (i, 0))

    flops = 2 * b_pad * (D * 64 + 64 * 32 + 32 * 16 + 16 * OUT_W)
    bytes_accessed = (xp.size * 4
                      + (w1.size + w2.size + w3.size + w4.size) * 2
                      + b_pack.size * 4
                      + b_pad * OUT_W * 4)
    cost = pl.CostEstimate(flops=flops,
                           transcendentals=b_pad * OUT_W,
                           bytes_accessed=bytes_accessed)

    out = pl.pallas_call(
        mlp_kernel,
        out_shape=jax.ShapeDtypeStruct((b_pad, OUT_W), jnp.float32),
        grid=(n_tiles,),
        in_specs=in_specs,
        out_specs=out_spec,
        compiler_params=pltpu.CompilerParams(
            dimension_semantics=("parallel",)),
        cost_estimate=cost,
    )(xp, w1, w2, w3, w4, b_pack)

    # slice away batch padding and the zero-padded output lanes
    return out[:B, :1]


def init_params(key, input_dim):
    """Deterministic init matching PyTorch nn.Linear default (uniform +/- 1/sqrt(fan_in))."""
    dims = [(input_dim, 64), (64, 32), (32, 16), (16, 1)]
    params = {}
    for i, (fan_in, fan_out) in enumerate(dims, start=1):
        key, kw, kb = jax.random.split(key, 3)
        bound = 1.0 / jnp.sqrt(fan_in)
        params[f"w{i}"] = jax.random.uniform(
            kw, (fan_in, fan_out), jnp.float32, -bound, bound)
        params[f"b{i}"] = jax.random.uniform(
            kb, (1, fan_out), jnp.float32, -bound, bound)
    return params


def reference_forward_quantized(x, p):
    """Mirrors the kernel's bf16-input / f32-accumulate numerics."""
    def mm(a, w):
        return jnp.dot(a.astype(jnp.bfloat16), w.astype(jnp.bfloat16),
                       preferred_element_type=jnp.float32)
    h = jnp.maximum(mm(x, p["w1"]) + p["b1"], 0.0)
    h = jnp.maximum(mm(h, p["w2"]) + p["b2"], 0.0)
    h = jnp.maximum(mm(h, p["w3"]) + p["b3"], 0.0)
    return jax.nn.sigmoid(mm(h, p["w4"]) + p["b4"])


def reference_forward_f32(x, p):
    h = jnp.maximum(x @ p["w1"] + p["b1"], 0.0)
    h = jnp.maximum(h @ p["w2"] + p["b2"], 0.0)
    h = jnp.maximum(h @ p["w3"] + p["b3"], 0.0)
    return jax.nn.sigmoid(h @ p["w4"] + p["b4"])


if __name__ == "__main__":
    key = jax.random.PRNGKey(0)
    B, D = 16, 32          # batch=16 samples (2 grid steps), input_dim=32 features
    kx, kp = jax.random.split(key)
    x = jax.random.normal(kx, (B, D), dtype=jnp.float32)
    params = init_params(kp, D)

    out = simple_nn_forward(x, params)
    out = jax.block_until_ready(out)
    assert out.shape == (B, 1)

    # Tight check vs. a reference that mirrors the kernel's bf16/f32 numerics.
    ref_q = reference_forward_quantized(x, params)
    assert jnp.allclose(out, ref_q, atol=1e-3, rtol=1e-3)
    # Loose sanity check vs. the full-f32 PyTorch-equivalent forward.
    ref_f32 = reference_forward_f32(x, params)
    assert jnp.allclose(out, ref_f32, atol=5e-2, rtol=5e-2)

    # TODO(synk): training-mode dropout (p=0.3) would need pltpu.prng_* inside
    # the kernel; inference-mode (identity) is implemented here.
    print("KERNEL_OK")
</pallas_src>

<mosaic_0001>
module attributes {stable_mosaic.version = 11 : i64} {
  func.func @mlp_kernel(%arg0: i32, %arg1: memref<8x32xf32, #tpu.memory_space<vmem>>, %arg2: memref<32x64xbf16, #tpu.memory_space<vmem>>, %arg3: memref<64x32xbf16, #tpu.memory_space<vmem>>, %arg4: memref<32x16xbf16, #tpu.memory_space<vmem>>, %arg5: memref<16x8xbf16, #tpu.memory_space<vmem>>, %arg6: memref<1x512xf32, #tpu.memory_space<vmem>>, %arg7: memref<8x8xf32, #tpu.memory_space<vmem>>) attributes {dimension_semantics = [#tpu.dimension_semantics<parallel>], iteration_bounds = array<i64: 2>, scalar_prefetch = 0 : i64, scratch_operands = 0 : i64, tpu.core_type = #tpu.core_type<tc>, window_params = [{transform_indices = @transform_0, window_bounds = array<i64: 8, 32>}, {pipeline_mode = #tpu.pipeline_mode<synchronous>, transform_indices = @transform_1, window_bounds = array<i64: 32, 64>}, {pipeline_mode = #tpu.pipeline_mode<synchronous>, transform_indices = @transform_2, window_bounds = array<i64: 64, 32>}, {pipeline_mode = #tpu.pipeline_mode<synchronous>, transform_indices = @transform_3, window_bounds = array<i64: 32, 16>}, {pipeline_mode = #tpu.pipeline_mode<synchronous>, transform_indices = @transform_4, window_bounds = array<i64: 16, 8>}, {pipeline_mode = #tpu.pipeline_mode<synchronous>, transform_indices = @transform_5, window_bounds = array<i64: 1, 512>}, {transform_indices = @transform_6, window_bounds = array<i64: 8, 8>}]} {
    %c0 = arith.constant 0 : index
    %c0_0 = arith.constant 0 : index
    %0 = vector.load %arg1[%c0, %c0_0] : memref<8x32xf32, #tpu.memory_space<vmem>>, vector<8x32xf32>
    %1 = arith.truncf %0 : vector<8x32xf32> to vector<8x32xbf16>
    %c0_1 = arith.constant 0 : index
    %c0_2 = arith.constant 0 : index
    %2 = vector.load %arg6[%c0_1, %c0_2] : memref<1x512xf32, #tpu.memory_space<vmem>>, vector<1x64xf32>
    %c0_3 = arith.constant 0 : index
    %c128 = arith.constant 128 : index
    %3 = vector.load %arg6[%c0_3, %c128] : memref<1x512xf32, #tpu.memory_space<vmem>>, vector<1x32xf32>
    %c0_4 = arith.constant 0 : index
    %c256 = arith.constant 256 : index
    %4 = vector.load %arg6[%c0_4, %c256] : memref<1x512xf32, #tpu.memory_space<vmem>>, vector<1x16xf32>
    %c0_5 = arith.constant 0 : index
    %c384 = arith.constant 384 : index
    %5 = vector.load %arg6[%c0_5, %c384] : memref<1x512xf32, #tpu.memory_space<vmem>>, vector<1x8xf32>
    %c0_6 = arith.constant 0 : index
    %c0_7 = arith.constant 0 : index
    %6 = vector.load %arg2[%c0_6, %c0_7] : memref<32x64xbf16, #tpu.memory_space<vmem>>, vector<32x64xbf16>
    %cst = arith.constant dense<0.000000e+00> : vector<8x64xf32>
    %7 = tpu.matmul %1, %6, %cst {dimension_numbers = #tpu.dot_dimension_numbers<[1], [0], [0], [1], [0, 0, 1, 1], [], []>} : vector<8x32xbf16>, vector<32x64xbf16>, vector<8x64xf32> -> vector<8x64xf32>
    %8 = vector.broadcast %2 : vector<1x64xf32> to vector<8x64xf32>
    %9 = arith.addf %7, %8 : vector<8x64xf32>
    %cst_8 = arith.constant 0.000000e+00 : f32
    %10 = vector.broadcast %cst_8 : f32 to vector<8x64xf32>
    %11 = arith.maximumf %9, %10 : vector<8x64xf32>
    %12 = arith.truncf %11 : vector<8x64xf32> to vector<8x64xbf16>
    %c0_9 = arith.constant 0 : index
    %c0_10 = arith.constant 0 : index
    %13 = vector.load %arg3[%c0_9, %c0_10] : memref<64x32xbf16, #tpu.memory_space<vmem>>, vector<64x32xbf16>
    %cst_11 = arith.constant dense<0.000000e+00> : vector<8x32xf32>
    %14 = tpu.matmul %12, %13, %cst_11 {dimension_numbers = #tpu.dot_dimension_numbers<[1], [0], [0], [1], [0, 0, 1, 1], [], []>} : vector<8x64xbf16>, vector<64x32xbf16>, vector<8x32xf32> -> vector<8x32xf32>
    %15 = vector.broadcast %3 : vector<1x32xf32> to vector<8x32xf32>
    %16 = arith.addf %14, %15 : vector<8x32xf32>
    %cst_12 = arith.constant 0.000000e+00 : f32
    %17 = vector.broadcast %cst_12 : f32 to vector<8x32xf32>
    %18 = arith.maximumf %16, %17 : vector<8x32xf32>
    %19 = arith.truncf %18 : vector<8x32xf32> to vector<8x32xbf16>
    %c0_13 = arith.constant 0 : index
    %c0_14 = arith.constant 0 : index
    %20 = vector.load %arg4[%c0_13, %c0_14] : memref<32x16xbf16, #tpu.memory_space<vmem>>, vector<32x16xbf16>
    %cst_15 = arith.constant dense<0.000000e+00> : vector<8x16xf32>
    %21 = tpu.matmul %19, %20, %cst_15 {dimension_numbers = #tpu.dot_dimension_numbers<[1], [0], [0], [1], [0, 0, 1, 1], [], []>} : vector<8x32xbf16>, vector<32x16xbf16>, vector<8x16xf32> -> vector<8x16xf32>
    %22 = vector.broadcast %4 : vector<1x16xf32> to vector<8x16xf32>
    %23 = arith.addf %21, %22 : vector<8x16xf32>
    %cst_16 = arith.constant 0.000000e+00 : f32
    %24 = vector.broadcast %cst_16 : f32 to vector<8x16xf32>
    %25 = arith.maximumf %23, %24 : vector<8x16xf32>
    %26 = arith.truncf %25 : vector<8x16xf32> to vector<8x16xbf16>
    %c0_17 = arith.constant 0 : index
    %c0_18 = arith.constant 0 : index
    %27 = vector.load %arg5[%c0_17, %c0_18] : memref<16x8xbf16, #tpu.memory_space<vmem>>, vector<16x8xbf16>
    %cst_19 = arith.constant dense<0.000000e+00> : vector<8x8xf32>
    %28 = tpu.matmul %26, %27, %cst_19 {dimension_numbers = #tpu.dot_dimension_numbers<[1], [0], [0], [1], [0, 0, 1, 1], [], []>} : vector<8x16xbf16>, vector<16x8xbf16>, vector<8x8xf32> -> vector<8x8xf32>
    %29 = vector.broadcast %5 : vector<1x8xf32> to vector<8x8xf32>
    %30 = arith.addf %28, %29 : vector<8x8xf32>
    %31 = arith.negf %30 : vector<8x8xf32>
    %32 = math.exp %31 : vector<8x8xf32>
    %cst_20 = arith.constant 1.000000e+00 : f32
    %33 = vector.broadcast %cst_20 : f32 to vector<8x8xf32>
    %34 = arith.addf %33, %32 : vector<8x8xf32>
    %35 = arith.divf %33, %34 : vector<8x8xf32>
    %c0_21 = arith.constant 0 : index
    %c0_22 = arith.constant 0 : index
    %36 = vector.load %arg7[%c0_21, %c0_22] : memref<8x8xf32, #tpu.memory_space<vmem>>, vector<8x8xf32>
    tpu.vector_store %arg7[%c0_21, %c0_22], %35 {strides = array<i32>} : memref<8x8xf32, #tpu.memory_space<vmem>>, vector<8x8xf32>,
    return
  }
  func.func @transform_0(%arg0: i32) -> (i32, i32) {
    %c0_i32 = arith.constant 0 : i32
    %c0_i32_0 = arith.constant 0 : i32
    return %arg0, %c0_i32 : i32, i32
  }
  func.func @transform_1(%arg0: i32) -> (i32, i32) {
    %c0_i32 = arith.constant 0 : i32
    %c0_i32_0 = arith.constant 0 : i32
    %c0_i32_1 = arith.constant 0 : i32
    return %c0_i32, %c0_i32_0 : i32, i32
  }
  func.func @transform_2(%arg0: i32) -> (i32, i32) {
    %c0_i32 = arith.constant 0 : i32
    %c0_i32_0 = arith.constant 0 : i32
    %c0_i32_1 = arith.constant 0 : i32
    return %c0_i32, %c0_i32_0 : i32, i32
  }
  func.func @transform_3(%arg0: i32) -> (i32, i32) {
    %c0_i32 = arith.constant 0 : i32
    %c0_i32_0 = arith.constant 0 : i32
    %c0_i32_1 = arith.constant 0 : i32
    return %c0_i32, %c0_i32_0 : i32, i32
  }
  func.func @transform_4(%arg0: i32) -> (i32, i32) {
    %c0_i32 = arith.constant 0 : i32
    %c0_i32_0 = arith.constant 0 : i32
    %c0_i32_1 = arith.constant 0 : i32
    return %c0_i32, %c0_i32_0 : i32, i32
  }
  func.func @transform_5(%arg0: i32) -> (i32, i32) {
    %c0_i32 = arith.constant 0 : i32
    %c0_i32_0 = arith.constant 0 : i32
    %c0_i32_1 = arith.constant 0 : i32
    return %c0_i32, %c0_i32_0 : i32, i32
  }
  func.func @transform_6(%arg0: i32) -> (i32, i32) {
    %c0_i32 = arith.constant 0 : i32
    %c0_i32_0 = arith.constant 0 : i32
    return %arg0, %c0_i32 : i32, i32
  }
}

</mosaic_0001>

<bundles_post_ra>
// kernel: tpu_custom_call.1
= control target key start
LH: loop header
LB: loop body
LE: loop exit
PB: predicated region body
PF: predicated region fallthrough
CT: control target
= control target key end

     0   :  { %s734_s21 = smov 0   ;;  %s803_s0 = inlined_call_operand.vmem [shape: f32[16,32], index: 0, kind: input, shape index: {}]   ;;  %s804_s1 = inlined_call_operand.vmem [shape: bf16[32,64], index: 1, kind: input, shape index: {}]   ;;  %s805_s2 = inlined_call_operand.vmem [shape: bf16[64,32], index: 2, kind: input, shape index: {}]   ;;  %s806_s3 = inlined_call_operand.vmem [shape: bf16[32,16], index: 3, kind: input, shape index: {}]   ;;  %s807_s4 = inlined_call_operand.vmem [shape: bf16[16,8], index: 4, kind: input, shape index: {}]   ;;  %s808_s5 = inlined_call_operand.vmem [shape: f32[1,512], index: 5, kind: input, shape index: {}]   ;;  %s809_s6 = inlined_call_operand.vmem [shape: f32[16,8], index: 6, kind: output, shape index: {}]  }
   0x1 LB: > { %s592_s22 = sadd.s32 4294967295, %s695_s21   ;;  %p596_p0 = scmp.ge.s32.totalorder %s695_s21, 1  ;;  %s695_s21 = sphi %s734_s21, %s16_s21  }
   0x2   : > { %p211_p1 = scmp.lt.s32.totalorder %s695_s21, 3 }
   0x4   : > { %p212_p2 = pnand %p596_p0, %p211_p1 }
   0x5   : > { %p239_p3 = scmp.lt.s32.totalorder (!%p212_p2), %s592_s22, 1 }
   0x6   : > { %215 = sbr.rel (%p212_p2) target bundleno = 845 (0x34d), region = 44 }
   0xb   : > { %v676_v0 = vld [vmem:[%s804_s1 + $0x8] sm:$0xff]   ;;  %v697_v1 = vmov 0.0   ;;  %v677_v2 = vld [vmem:[%s804_s1] sm:$0xff]   ;;  %vm698_vm0 = vmmov 0   ;;  %v678_v3 = vld [vmem:[%s805_s2 + $0x18] sm:$0xff]   ;;  %s811_s22 = smov (!%p239_p3, %s592_s22), 1 }
   0xc   : > { %632 = vmatprep.subr.bf16.mxu0 %v697_v1  ;;  %640 = vmatprep.subr.bf16.mxu1 %v697_v1  ;;  %v679_v4 = vld [vmem:[%s805_s2 + $0x10] sm:$0xff]   ;;  %s597_s7 = sshll.u32 %s811_s22, 3  ;;  %vm276_vm1 = vcmask 261120   ;;  %v680_v7 = vld [vmem:[%s805_s2 + $0x8] sm:$0xff]   ;;  %v681_v8 = vld [vmem:[%s805_s2] sm:$0xff]   ;;  %vm360_vm2 = vcmask 523264  }
   0xd   : > { %633 = vmatpush3.bf16.msra.mxu0 %v676_v0  ;;  %636 = vmatprep.mubr.msk.bf16.mxu0 %vm698_vm0, %v697_v1  ;;  %s242_s10 = scalar_lea.vmem %s803_s0, %s597_s7  ;;  %v682_v9 = vld [vmem:[%s806_s3 + $0x8] sm:$0xff]   ;;  %v599_v10 = vld [vmem:[%s808_s5] ss:$0 sm:$0xff]  ;;  %v603_v19 = vld [vmem:[%s808_s5 + $0x1] ss:$0 sm:$0xff]  ;;  %vm487_vm3 = vcmask 130048  }
   0xe   : > { %634 = vmatprep.subr.bf16.mxu0 %v697_v1  ;;  %648 = vmatprep.mubr.msk.bf16.mxu1 %vm698_vm0, %v697_v1  ;;  %v248_v5 = vld [vmem:[%s242_s10] sm:$0xff]  ;;  %s246_s10 = scalar_lea.vmem %s809_s6, %s597_s7  ;;  %vm537_vm4 = vcmask 64512  }
   0xf   : > { %641 = vmatpush3.bf16.msra.mxu1 %v678_v3  ;;  %v249_v6 = vpack.c.bf16 %v248_v5, %v248_v5  ;;  %v683_v18 = vld [vmem:[%s806_s3] sm:$0xff]  }
  0x10   : > { %642 = vmatprep.subr.bf16.mxu1 %v697_v1  ;;  %v684_v25 = vld [vmem:[%s807_s4] sm:$0xff]  }
  0x11   : > { %635 = vmatpush3.bf16.msra.mxu0 %v677_v2  ;;  %v609_v28 = vld [vmem:[%s808_s5 + $0x2] ss:$0 sm:$0xff]  ;;  %v613_v36 = vld [vmem:[%s808_s5 + $0x3] ss:$0 sm:$0xff] }
  0x12   : > { %652 = vmatprep.subr.bf16.mxu0 %v697_v1 }
  0x13   : > { %643 = vmatpush3.bf16.msra.mxu1 %v679_v4 }
  0x14   : > { %644 = vmatprep.subr.bf16.mxu1 %v697_v1  ;;  %637 = vmatmul.mubr.msk.bf16.vlgmr.msra.gmra.mxu0 %vm276_vm1, %v249_v6 }
  0x15   : > { %656 = vmatprep.mubr.msk.bf16.mxu0 %vm698_vm0, %v697_v1  ;;  %653 = vmatpush3.bf16.msra.mxu0 %v682_v9 }
  0x16   : > { %654 = vmatprep.subr.bf16.mxu0 %v697_v1 }
  0x17   : > { %645 = vmatpush3.bf16.msra.mxu1 %v680_v7 }
  0x18   : > { %646 = vmatprep.subr.bf16.mxu1 %v697_v1 }
  0x19   : > { %655 = vmatpush3.bf16.msra.mxu0 %v683_v18 }
  0x1a   : > { %660 = vmatprep.subr.bf16.mxu0 %v697_v1 }
  0x1b   : > { %647 = vmatpush3.bf16.msra.mxu1 %v681_v8 }
  0xd4   : > { %v314_v11 = vpop.f32.mrf.mxu0 }
  0xd5   : > { %v315_v12 = vadd.f32 %v599_v10, %v314_v11 }
  0xd6   : > { %v638_v13 = vpop.f32.mrf.mxu0 }
  0xd7   : > { %v320_v14 = vmax.f32 %v315_v12, 0.0 }
  0xd8   : > { %v317_v15 = vpop.f32.mrf.mxu0 }
  0xd9   : > { %v321_v16 = vpack.c.bf16 %v320_v14, %v320_v14 }
  0xda   : > { %v639_v17 = vpop.f32.mrf.mxu0 }
  0xdb   : > { %649 = vmatmul.mubr.msk.bf16.vlgmr.msra.gmra.mxu1 %vm360_vm2, %v321_v16 }
 0x19b   : > { %v398_v20 = vpop.f32.mrf.mxu1 }
 0x19c   : > { %v399_v21 = vadd.f32 %v603_v19, %v398_v20 }
 0x19d   : > { %v650_v22 = vpop.f32.mrf.mxu1 }
 0x19e   : > { %v404_v23 = vmax.f32 %v399_v21, 0.0 }
 0x19f   : > { %v401_v24 = vpop.f32.mrf.mxu1 }
 0x1a0   : > { %v405_v26 = vpack.c.bf16 %v404_v23, %v404_v23 }
 0x1a1   : > { %v651_v27 = vpop.f32.mrf.mxu1 }
 0x1a2   : > { %657 = vmatmul.mubr.msk.bf16.vlgmr.msra.gmra.mxu0 %vm276_vm1, %v405_v26 }
 0x1a3   : > { %661 = vmatpush3.bf16.msra.mxu0 %v684_v25  ;;  %662 = vmatprep.mubr.msk.bf16.mxu0 %vm698_vm0, %v697_v1 }
 0x262   : > { %v465_v29 = vpop.f32.mrf.mxu0 }
 0x263   : > { %v466_v30 = vadd.f32 %v609_v28, %v465_v29 }
 0x264   : > { %v658_v31 = vpop.f32.mrf.mxu0 }
 0x265   : > { %v471_v32 = vmax.f32 %v466_v30, 0.0 }
 0x266   : > { %v468_v33 = vpop.f32.mrf.mxu0 }
 0x267   : > { %v472_v34 = vpack.c.bf16 %v471_v32, %v471_v32 }
 0x268   : > { %v659_v35 = vpop.f32.mrf.mxu0 }
 0x269   : > { %663 = vmatmul.mubr.msk.bf16.vlgmr.msra.gmra.mxu0 %vm487_vm3, %v472_v34 }
 0x329   : > { %v525_v37 = vpop.f32.mrf.mxu0 }
 0x32a   : > { %v526_v38 = vadd.f32 %v613_v36, %v525_v37 }
 0x32b   : > { %v664_v39 = vpop.f32.mrf.mxu0 }
 0x32c   : > { %v616_v40 = vmul.f32 -1.442695, %v526_v38 }
 0x32d   : > { %v528_v41 = vpop.f32.mrf.mxu0 }
 0x32e   : > { %685 = vpow2.f32 %v616_v40 }
 0x32f   : > { %v665_v42 = vpop.f32.mrf.mxu0 }
 0x33b   : > { %v686_v43 = vpop.eup %685 }
 0x33c   : > { %v534_v44 = vadd.f32 1.0, %v686_v43 }
 0x33e   : > { %687 = vrcp.f32 %v534_v44 }
 0x34b   : > { %v688_v45 = vpop.eup %687 }
 0x34c   : > { %538 = vst.msk [vmem:[%s246_s10] sm:$0xff] %vm537_vm4, %v688_v45 }
 0x34d PF: > { %s16_s21 = sadd.s32 1, %s695_s21  }
 0x34e   : > { %p13_p4 = scmp.ge.s32.totalorder %s16_s21, 4  }
 0x350   :  { %15 = sbr.rel (!%p13_p4) target bundleno = 1 (0x1), region = 74 }

</bundles_post_ra>
